<compile_context>
chip_gen: v5e
topology: v5e:2x2
jax: 0.10.0
libtpu: 0.0.40
codegen_flags: <defaults>
</compile_context>

<pallas_src>
import functools
import math

import jax
import jax.numpy as jnp
from jax.experimental import pallas as pl
from jax.experimental.pallas import tpu as pltpu

_EPS = 1e-12
_X_CLAMP = float(-math.log(_EPS))   # ~27.63; logit clamp mirroring clamp(p, eps, 1-eps)
_LANES = 128
_SUBLANES = 8
_MAX_BLOCK_ROWS = 4096              # 4096*128*4B = 2 MiB per f32 input block
_NUM_SPLITS = 2                     # leading 'parallel' axis (one per v7x TensorCore)


def _bce_sum_kernel(x_ref, t_ref, out_ref, *, blocks_per_split, block_rows,
                    n_full_blocks, tail_elems, mask_needed, x_clamp):
    """Accumulate per-split masked BCE-with-logits partial sums into (8,128)."""
    c = pl.program_id(0)            # split index   ('parallel' axis)
    i = pl.program_id(1)            # block-in-split ('arbitrary' reduction axis)

    @pl.when(i == 0)
    def _():
        out_ref[...] = jnp.zeros_like(out_ref)

    x = x_ref[...].astype(jnp.float32)
    t = t_ref[...].astype(jnp.float32)

    # Stable BCE-with-logits; clamp mirrors clamp(sigmoid(x), eps, 1-eps).
    x = jnp.clip(x, -x_clamp, x_clamp)
    loss = jnp.maximum(x, 0.0) - x * t + jnp.log(1.0 + jnp.exp(-jnp.abs(x)))

    def _accumulate(vals):
        # Per-vreg partial sums (pure VALU adds) into the resident output block.
        out_ref[...] += vals.reshape(-1, _SUBLANES, _LANES).sum(axis=0)

    if mask_needed:                                   # static Python condition
        block_elems = block_rows * _LANES
        g = c * blocks_per_split + i                  # global block index (unclamped)
        is_full = g < n_full_blocks

        @pl.when(is_full)
        def _():
            _accumulate(loss)                         # interior blocks: no mask cost

        @pl.when(jnp.logical_not(is_full))
        def _():
            # Remaining valid elements in this block (<= 0 for phantom blocks).
            remaining = tail_elems - (g - n_full_blocks) * block_elems
            row = jax.lax.broadcasted_iota(jnp.int32, loss.shape, 0)
            col = jax.lax.broadcasted_iota(jnp.int32, loss.shape, 1)
            local = row * _LANES + col
            _accumulate(jnp.where(local < remaining, loss, 0.0))
    else:
        _accumulate(loss)


def custom_cross_entropy(inputs, target, *, max_block_rows=_MAX_BLOCK_ROWS):
    """Pallas equivalent of CustomCrossEntropy.forward(inputs, target)."""
    assert inputs.shape == target.shape
    assert max_block_rows % _SUBLANES == 0
    n_elem = inputs.size
    assert n_elem > 0

    # Lane-dense slab: (rows, 128) with rows a multiple of 8.
    rows = pl.cdiv(n_elem, _LANES)
    rows = pl.cdiv(rows, _SUBLANES) * _SUBLANES
    pad = rows * _LANES - n_elem

    def to_slab(a):
        flat = jnp.ravel(a)                 # free: contiguous reshape, keeps dtype
        if pad:
            # Copy only for n_elem not a multiple of 1024 (ragged tail); the
            # common aligned case is zero-copy.
            flat = jnp.pad(flat, (0, pad))
        return flat.reshape(rows, _LANES)

    x2 = to_slab(inputs)
    t2 = to_slab(target)

    block_rows = min(max_block_rows, rows)            # multiple of 8 by construction
    block_elems = block_rows * _LANES
    total_blocks = pl.cdiv(rows, block_rows)
    num_splits = _NUM_SPLITS if total_blocks >= _NUM_SPLITS else 1
    bps = pl.cdiv(total_blocks, num_splits)           # blocks per split

    covered = num_splits * bps * block_elems          # elements the grid sweeps over
    mask_needed = covered != n_elem
    n_full_blocks = n_elem // block_elems             # fully-valid global blocks
    tail_elems = n_elem - n_full_blocks * block_elems

    has_phantom = num_splits * bps > total_blocks
    if has_phantom:
        # Clamp phantom blocks onto the last real block; the kernel masks them to 0.
        def in_index_map(c, i):
            return (jnp.minimum(c * bps + i, total_blocks - 1), 0)
    else:
        def in_index_map(c, i):
            return (c * bps + i, 0)

    in_spec = pl.BlockSpec((block_rows, _LANES), in_index_map)
    out_spec = pl.BlockSpec((None, _SUBLANES, _LANES), lambda c, i: (c, 0, 0))

    cost = pl.CostEstimate(
        flops=10 * n_elem,
        transcendentals=2 * n_elem,
        bytes_accessed=n_elem * (inputs.dtype.itemsize + target.dtype.itemsize)
        + num_splits * _SUBLANES * _LANES * 4,
    )

    partials = pl.pallas_call(
        functools.partial(
            _bce_sum_kernel,
            blocks_per_split=bps,
            block_rows=block_rows,
            n_full_blocks=n_full_blocks,
            tail_elems=tail_elems,
            mask_needed=mask_needed,
            x_clamp=_X_CLAMP,
        ),
        out_shape=jax.ShapeDtypeStruct((num_splits, _SUBLANES, _LANES), jnp.float32),
        grid_spec=pltpu.PrefetchScalarGridSpec(
            num_scalar_prefetch=0,
            grid=(num_splits, bps),
            in_specs=[in_spec, in_spec],
            out_specs=out_spec,
        ),
        compiler_params=pltpu.CompilerParams(
            dimension_semantics=("parallel", "arbitrary"),
            # 2 inputs x 2 pipeline buffers x 2 MiB = 8 MiB of blocks plus
            # elementwise temporaries on 4096x128 tiles; 48 MiB leaves headroom
            # on every generation (v7x has 64 MiB/TC physical).
            vmem_limit_bytes=48 * 1024 * 1024,
        ),
        cost_estimate=cost,
    )(x2, t2)

    # Global mean over the original (unpadded) element count.
    return jnp.sum(partials) / jnp.float32(n_elem)


def _reference(inputs, target):
    # Literal f32 port of the PyTorch forward (note: for |x| >~ 17 with matching
    # labels this reference itself produces NaN; test inputs stay well inside).
    p = jax.nn.sigmoid(inputs.astype(jnp.float32))
    p = jnp.clip(p, _EPS, 1.0 - _EPS)
    loss = -(target * jnp.log(p) + (1.0 - target) * jnp.log(1.0 - p))
    return jnp.mean(loss)


if __name__ == "__main__":
    key = jax.random.PRNGKey(0)
    k1, k2, k3, k4 = jax.random.split(key, 4)

    # Primary NCHW-style shapes: batch=2, channels=4, spatial=16x16.
    x = jax.random.normal(k1, (2, 4, 16, 16), dtype=jnp.float32) * 2.0
    tgt = (jax.random.uniform(k2, (2, 4, 16, 16)) > 0.5).astype(jnp.float32)

    out = jax.block_until_ready(custom_cross_entropy(x, tgt))
    ref = _reference(x, tgt)
    assert jnp.allclose(out, ref, rtol=1e-4, atol=1e-5), (out, ref)

    # Ragged size (not a multiple of 1024): exercises the masked-tail path.
    xr = jax.random.normal(k3, (2, 3, 7, 11), dtype=jnp.float32) * 2.0
    tr = (jax.random.uniform(k4, (2, 3, 7, 11)) > 0.5).astype(jnp.float32)
    out_r = jax.block_until_ready(custom_cross_entropy(xr, tr))
    ref_r = _reference(xr, tr)
    assert jnp.allclose(out_r, ref_r, rtol=1e-4, atol=1e-5), (out_r, ref_r)

    # Force the two-split ('parallel') multi-block path on a small input.
    out_s = jax.block_until_ready(custom_cross_entropy(x, tgt, max_block_rows=8))
    assert jnp.allclose(out_s, ref, rtol=1e-4, atol=1e-5), (out_s, ref)

    print("KERNEL_OK")
</pallas_src>

<mosaic_0001>
module attributes {stable_mosaic.version = 11 : i64} {
  func.func @_bce_sum_kernel(%arg0: i32, %arg1: i32, %arg2: memref<16x128xf32, #tpu.memory_space<vmem>>, %arg3: memref<16x128xf32, #tpu.memory_space<vmem>>, %arg4: memref<1x8x128xf32, #tpu.memory_space<vmem>>) attributes {dimension_semantics = [#tpu.dimension_semantics<parallel>, #tpu.dimension_semantics<arbitrary>], iteration_bounds = array<i64: 1, 1>, scalar_prefetch = 0 : i64, scratch_operands = 0 : i64, tpu.core_type = #tpu.core_type<tc>, window_params = [{transform_indices = @transform_0, window_bounds = array<i64: 16, 128>}, {transform_indices = @transform_1, window_bounds = array<i64: 16, 128>}, {transform_indices = @transform_2, window_bounds = array<i64: 1, 8, 128>}]} {
    %c0_i32 = arith.constant 0 : i32
    %0 = arith.cmpi eq, %arg1, %c0_i32 : i32
    %1 = arith.extui %0 : i1 to i32
    %c0_i32_0 = arith.constant 0 : i32
    %2 = arith.cmpi ne, %1, %c0_i32_0 : i32
    scf.if %2 {
      %cst_15 = arith.constant 0.000000e+00 : f32
      %29 = vector.broadcast %cst_15 : f32 to vector<8x128xf32>
      %c0_16 = arith.constant 0 : index
      %c0_17 = arith.constant 0 : index
      %c0_18 = arith.constant 0 : index
      %30 = vector.load %arg4[%c0_16, %c0_17, %c0_18] : memref<1x8x128xf32, #tpu.memory_space<vmem>>, vector<1x8x128xf32>
      %31 = vector.shape_cast %30 : vector<1x8x128xf32> to vector<8x128xf32>
      %32 = vector.shape_cast %29 : vector<8x128xf32> to vector<1x8x128xf32>
      tpu.vector_store %arg4[%c0_16, %c0_17, %c0_18], %32 {strides = array<i32>} : memref<1x8x128xf32, #tpu.memory_space<vmem>>, vector<1x8x128xf32>,
    } else {
    }
    %c0 = arith.constant 0 : index
    %c0_1 = arith.constant 0 : index
    %3 = vector.load %arg2[%c0, %c0_1] : memref<16x128xf32, #tpu.memory_space<vmem>>, vector<16x128xf32>
    %c0_2 = arith.constant 0 : index
    %c0_3 = arith.constant 0 : index
    %4 = vector.load %arg3[%c0_2, %c0_3] : memref<16x128xf32, #tpu.memory_space<vmem>>, vector<16x128xf32>
    %cst = arith.constant -27.6310215 : f32
    %cst_4 = arith.constant 27.6310215 : f32
    %5 = vector.broadcast %cst : f32 to vector<16x128xf32>
    %6 = arith.maximumf %5, %3 : vector<16x128xf32>
    %7 = vector.broadcast %cst_4 : f32 to vector<16x128xf32>
    %8 = arith.minimumf %7, %6 : vector<16x128xf32>
    %cst_5 = arith.constant 0.000000e+00 : f32
    %9 = vector.broadcast %cst_5 : f32 to vector<16x128xf32>
    %10 = arith.maximumf %8, %9 : vector<16x128xf32>
    %11 = arith.mulf %8, %4 : vector<16x128xf32>
    %12 = arith.subf %10, %11 : vector<16x128xf32>
    %13 = math.absf %8 : vector<16x128xf32>
    %cst_6 = arith.constant 0.000000e+00 : f32
    %14 = vector.broadcast %cst_6 : f32 to vector<16x128xf32>
    %15 = arith.subf %14, %13 : vector<16x128xf32>
    %16 = math.exp %15 : vector<16x128xf32>
    %cst_7 = arith.constant 1.000000e+00 : f32
    %17 = vector.broadcast %cst_7 : f32 to vector<16x128xf32>
    %18 = arith.addf %17, %16 : vector<16x128xf32>
    %19 = math.log %18 : vector<16x128xf32>
    %20 = arith.addf %12, %19 : vector<16x128xf32>
    %c0_8 = arith.constant 0 : index
    %c0_9 = arith.constant 0 : index
    %c0_10 = arith.constant 0 : index
    %21 = vector.load %arg4[%c0_8, %c0_9, %c0_10] : memref<1x8x128xf32, #tpu.memory_space<vmem>>, vector<1x8x128xf32>
    %22 = vector.shape_cast %21 : vector<1x8x128xf32> to vector<8x128xf32>
    %23 = vector.shape_cast %20 : vector<16x128xf32> to vector<2x8x128xf32>
    %cst_11 = arith.constant dense<0.000000e+00> : vector<8x128xf32>
    %24 = vector.multi_reduction <add>, %23, %cst_11 [0] : vector<2x8x128xf32> to vector<8x128xf32>
    %25 = arith.addf %22, %24 : vector<8x128xf32>
    %c0_12 = arith.constant 0 : index
    %c0_13 = arith.constant 0 : index
    %c0_14 = arith.constant 0 : index
    %26 = vector.load %arg4[%c0_12, %c0_13, %c0_14] : memref<1x8x128xf32, #tpu.memory_space<vmem>>, vector<1x8x128xf32>
    %27 = vector.shape_cast %26 : vector<1x8x128xf32> to vector<8x128xf32>
    %28 = vector.shape_cast %25 : vector<8x128xf32> to vector<1x8x128xf32>
    tpu.vector_store %arg4[%c0_12, %c0_13, %c0_14], %28 {strides = array<i32>} : memref<1x8x128xf32, #tpu.memory_space<vmem>>, vector<1x8x128xf32>,
    return
  }
  func.func @transform_0(%arg0: i32, %arg1: i32) -> (i32, i32) {
    %c1_i32 = arith.constant 1 : i32
    %0 = arith.muli %arg0, %c1_i32 : i32
    %1 = arith.addi %0, %arg1 : i32
    %c0_i32 = arith.constant 0 : i32
    %c0_i32_0 = arith.constant 0 : i32
    return %1, %c0_i32 : i32, i32
  }
  func.func @transform_1(%arg0: i32, %arg1: i32) -> (i32, i32) {
    %c1_i32 = arith.constant 1 : i32
    %0 = arith.muli %arg0, %c1_i32 : i32
    %1 = arith.addi %0, %arg1 : i32
    %c0_i32 = arith.constant 0 : i32
    %c0_i32_0 = arith.constant 0 : i32
    return %1, %c0_i32 : i32, i32
  }
  func.func @transform_2(%arg0: i32, %arg1: i32) -> (i32, i32, i32) {
    %c0_i32 = arith.constant 0 : i32
    %c0_i32_0 = arith.constant 0 : i32
    %c0_i32_1 = arith.constant 0 : i32
    return %arg0, %c0_i32, %c0_i32_0 : i32, i32, i32
  }
}

</mosaic_0001>

<bundles_post_ra>
// kernel: tpu_custom_call.1
= control target key start
LH: loop header
LB: loop body
LE: loop exit
PB: predicated region body
PF: predicated region fallthrough
CT: control target
= control target key end

     0   :  { %7 = vsyncpa [#allocation3], 0  ;;  %s236_s0 = inlined_call_operand.hbm [shape: f32[16,128], index: 0, kind: input, shape index: {}]   ;;  %s237_s1 = inlined_call_operand.hbm [shape: f32[16,128], index: 1, kind: input, shape index: {}]   ;;  %s238_s2 = inlined_call_operand.hbm [shape: f32[1,8,128], index: 2, kind: output, shape index: {}]  }
   0x1   :  { %8 = vsyncpa [#allocation6], 0 }
   0x2   :  { %9 = vsyncpa [#allocation4], 0  ;;  %s18_s11 = sshll.u32 %s236_s0, 4  ;;  %s207_s12 = smov [#allocation2]   ;;  %s19_s11 = int_to_ptr.hbm [resolvable:$true] %s18_s11 }
   0x3   :  { %s20_s13 = sshll.u32 %s207_s12, 4  ;;  %s35_s16 = sshll.u32 %s237_s1, 4  ;;  %s21_s13 = int_to_ptr.vmem [resolvable:$true] %s20_s13  ;;  %s36_s16 = int_to_ptr.hbm [resolvable:$true] %s35_s16 }
   0x4   :  { %s208_s17 = smov 128   ;;  %s209_s18 = smov 8  }
   0x5   :  { %26 = dma.hbm_to_vmem [thread:$0]  %s19_s11, 256, %s21_s13, [#allocation3], %s208_s17, %s208_s17, %s209_s18  }
   0x6   :  { %s210_s19 = smov [#allocation5]  }
   0x7   :  { %s37_s20 = sshll.u32 %s210_s19, 4  ;;  %s38_s20 = int_to_ptr.vmem [resolvable:$true] %s37_s20 }
   0x8   :  { %43 = dma.hbm_to_vmem [thread:$0]  %s36_s16, 256, %s38_s20, [#allocation6], %s208_s17, %s208_s17, %s209_s18  }
   0x9   :  { %201 = dma.done.wait [#allocation3], 256  }
   0xa   :  { %202 = vsyncadd [#allocation3], 4294967040 }
   0xb   :  { %203 = dma.done.wait [#allocation6], 256  }
   0xc   :  { %204 = vsyncadd [#allocation6], 4294967040  ;;  %v61_v0 = vld [vmem:[#allocation2] sm:$0xff]  ;;  %v62_v1 = vld [vmem:[#allocation2 + $0x8] sm:$0xff]  ;;  %s211_s0 = smov [#allocation7]   ;;  %s102_s23 = sshll.u32 %s238_s2, 4  ;;  %s103_s23 = int_to_ptr.hbm [resolvable:$true] %s102_s23 }
   0xd   :  { %v113_v2 = vclamps-f32 %v61_v0, 27.631021  ;;  %v114_v3 = vclamps-f32 %v62_v1, 27.631021  ;;  %v63_v12 = vld [vmem:[#allocation5] sm:$0xff]  ;;  %v64_v14 = vld [vmem:[#allocation5 + $0x8] sm:$0xff] }
   0xe   :  { %s100_s1 = sshll.u32 %s211_s0, 4  ;;  %s101_s1 = int_to_ptr.vmem [resolvable:$true] %s100_s1 }
   0xf   :  { %v75_v4 = vand.u32 2147483647, %v113_v2  ;;  %v76_v5 = vand.u32 2147483647, %v114_v3  ;;  %v69_v16 = vmax.f32 %v113_v2, 0.0  ;;  %v71_v17 = vmul.f32 %v113_v2, %v63_v12 }
  0x10   :  { %v70_v18 = vmax.f32 %v114_v3, 0.0  ;;  %v72_v19 = vmul.f32 %v114_v3, %v64_v14 }
  0x11   :  { %v77_v6 = vsub.f32 0.0, %v75_v4  ;;  %v78_v7 = vsub.f32 0.0, %v76_v5  ;;  %v73_v20 = vsub.f32 %v69_v16, %v71_v17 }
  0x12   :  { %v74_v22 = vsub.f32 %v70_v18, %v72_v19 }
  0x13   :  { %v79_v8 = vmul.f32 1.442695, %v77_v6  ;;  %v81_v9 = vmul.f32 1.442695, %v78_v7 }
  0x15   :  { %121 = vpow2.f32 %v79_v8 }
  0x16   :  { %123 = vpow2.f32 %v81_v9 }
  0x1b   :  { %v122_v10 = vpop.eup %121 }
  0x1c   :  { %v124_v11 = vpop.eup %123  ;;  %v83_v13 = vadd.f32 1.0, %v122_v10 }
  0x1d   :  { %v84_v15 = vadd.f32 1.0, %v124_v11 }
  0x1e   :  { %125 = vlog2.f32 %v83_v13 }
  0x1f   :  { %127 = vlog2.f32 %v84_v15 }
  0x24   :  { %v126_v21 = vpop.eup %125 }
  0x25   :  { %v128_v23 = vpop.eup %127  ;;  %v86_v24 = vmul.f32 0.6931472, %v126_v21 }
  0x26   :  { %v88_v25 = vmul.f32 0.6931472, %v128_v23 }
  0x27   :  { %v89_v26 = vadd.f32 %v86_v24, %v73_v20 }
  0x28   :  { %v90_v27 = vadd.f32 %v88_v25, %v74_v22 }
  0x2a   :  { %v92_v28 = vadd.f32 %v90_v27, %v89_v26 }
  0x2c   :  { %94 = vst [vmem:[#allocation7] sm:$0xff] %v92_v28 }
  0x2d   :  { %105 = dma.vmem_to_hbm [thread:$0]  %s101_s1, 128, %s103_s23, [#allocation4]  }
  0x2e   :  { %205 = dma.done.wait [#allocation4], 128  }
  0x2f   :  { %206 = vsyncadd [#allocation4], 4294967168 }
  0x30   :  { %110 = vsyncpa [#allocation3], 1 }
  0x31   :  { %111 = vsyncpa [#allocation6], 1 }
  0x32   :  { %112 = vsyncpa [#allocation4], 1 }

</bundles_post_ra>
